<compile_context>
chip_gen: v7x
topology: tpu7x:2x2x1
jax: 0.10.0
libtpu: 0.0.40
codegen_flags: <defaults>
</compile_context>

<pallas_src>
import jax
import jax.numpy as jnp
from jax.experimental import pallas as pl
from jax.experimental.pallas import tpu as pltpu


def _head_kernel(feat_ref, w_ref, b_ref, out_ref):
    """Fused global-average-pool + linear head (one batch tile, full C).

    feat_ref : (bn, HW, C)     flattened feature-map tile
    w_ref    : (C, NCp)        dense weight, pre-scaled by 1/(H*W), lane-padded
    b_ref    : (1, NCp)        dense bias, lane-padded
    out_ref  : (bn, NCp)
    """
    # Sum over spatial positions in f32 (the 1/(H*W) factor is folded into w).
    pooled = jnp.sum(feat_ref[...].astype(jnp.float32), axis=1)          # (bn, C)
    # Contract channels against the dense weight on the MXU, native weight
    # dtype operands (bf16 x bf16 -> f32 when the backbone emits bf16).
    out = jnp.dot(pooled.astype(w_ref.dtype), w_ref[...],
                  preferred_element_type=jnp.float32)                    # (bn, NCp)
    out_ref[...] = (out + b_ref[...].astype(jnp.float32)).astype(out_ref.dtype)


def net_head(feat_nhwc, w, b):
    """Global avg-pool + Linear head.

    feat_nhwc : (N, H, W, C) backbone features (C = 1280 for EfficientNet-b0)
    w         : (C, num_classes) dense_output weight (stored as in_features x out)
    b         : (num_classes,)   dense_output bias
    returns   : (N, num_classes)
    """
    N, H, W, C = feat_nhwc.shape
    num_classes = w.shape[1]
    assert w.shape[0] == C

    HW = H * W
    feat = feat_nhwc.reshape(N, HW, C)

    # Lane-dense output: pad num_classes up to a multiple of 128.
    NCp = max(128, ((num_classes + 127) // 128) * 128)
    # Fold the average-pool scale into the weight; zero-pad the extra columns.
    w_p = jnp.zeros((C, NCp), dtype=w.dtype).at[:, :num_classes].set(
        w * jnp.asarray(1.0 / HW, dtype=w.dtype))
    b_p = jnp.zeros((1, NCp), dtype=b.dtype).at[0, :num_classes].set(b)

    # Batch tile: either the full batch, or a multiple-of-8 tile (so the output
    # block's second-to-last dim stays layout-legal) for large N.
    if N % 8 == 0:
        bn = min(N, 128)
    else:
        bn = N
    grid = (pl.cdiv(N, bn),)

    # Explicit VMEM budget: double-buffered feat tile + resident w/b/out.
    feat_tile_bytes = bn * HW * C * feat.dtype.itemsize
    fixed_bytes = (C * NCp * w_p.dtype.itemsize
                   + NCp * b_p.dtype.itemsize
                   + bn * NCp * feat.dtype.itemsize)
    vmem_limit = int(2 * (2 * feat_tile_bytes + 2 * fixed_bytes) + (1 << 20))

    out_padded = pl.pallas_call(
        _head_kernel,
        out_shape=jax.ShapeDtypeStruct((N, NCp), feat.dtype),
        grid_spec=pltpu.PrefetchScalarGridSpec(
            num_scalar_prefetch=0,
            grid=grid,
            in_specs=[
                pl.BlockSpec((bn, HW, C), lambda i: (i, 0, 0)),
                pl.BlockSpec((C, NCp), lambda i: (0, 0)),
                pl.BlockSpec((1, NCp), lambda i: (0, 0)),
            ],
            out_specs=pl.BlockSpec((bn, NCp), lambda i: (i, 0)),
        ),
        compiler_params=pltpu.CompilerParams(
            dimension_semantics=("parallel",),   # batch axis: megacore-shardable
            vmem_limit_bytes=vmem_limit,
        ),
    )(feat, w_p, b_p)

    return out_padded[:, :num_classes]


if __name__ == "__main__":
    key = jax.random.PRNGKey(0)
    k_feat, k_w, k_b = jax.random.split(key, 3)

    # Small shapes consistent with the module: 1280 feature channels
    # (fixed by EfficientNet-b0 / Linear(1280, .)), small batch & spatial.
    N, H, W, C = 2, 4, 4, 1280
    num_classes = 10

    # Deterministic synthetic backbone features (stand-in for extract_features).
    feat = jax.random.normal(k_feat, (N, H, W, C), dtype=jnp.float32)

    # Deterministic dense_output parameters (Linear(1280, num_classes)).
    w = jax.random.normal(k_w, (C, num_classes), dtype=jnp.float32) * 0.02
    b = jax.random.normal(k_b, (num_classes,), dtype=jnp.float32) * 0.02

    out = net_head(feat, w, b)
    out = jax.block_until_ready(out)

    # Pure-JAX reference: avg_pool2d over full spatial extent + linear.
    ref = jnp.mean(feat, axis=(1, 2)) @ w + b
    assert out.shape == (N, num_classes)
    assert jnp.allclose(out, ref, atol=1e-4, rtol=1e-4)

    print("KERNEL_OK")
</pallas_src>

<mosaic_0001>
module attributes {stable_mosaic.version = 11 : i64} {
  func.func @_head_kernel(%arg0: i32, %arg1: memref<2x16x1280xf32, #tpu.memory_space<vmem>>, %arg2: memref<1280x128xf32, #tpu.memory_space<vmem>>, %arg3: memref<1x128xf32, #tpu.memory_space<vmem>>, %arg4: memref<2x128xf32, #tpu.memory_space<vmem>>) attributes {dimension_semantics = [#tpu.dimension_semantics<parallel>], iteration_bounds = array<i64: 1>, scalar_prefetch = 0 : i64, scratch_operands = 0 : i64, tpu.core_type = #tpu.core_type<tc>, window_params = [{transform_indices = @transform_0, window_bounds = array<i64: 2, 16, 1280>}, {pipeline_mode = #tpu.pipeline_mode<synchronous>, transform_indices = @transform_1, window_bounds = array<i64: 1280, 128>}, {pipeline_mode = #tpu.pipeline_mode<synchronous>, transform_indices = @transform_2, window_bounds = array<i64: 1, 128>}, {transform_indices = @transform_3, window_bounds = array<i64: 2, 128>}]} {
    %c0 = arith.constant 0 : index
    %c0_0 = arith.constant 0 : index
    %c0_1 = arith.constant 0 : index
    %0 = vector.load %arg1[%c0, %c0_0, %c0_1] : memref<2x16x1280xf32, #tpu.memory_space<vmem>>, vector<2x16x1280xf32>
    %cst = arith.constant dense<0.000000e+00> : vector<2x1280xf32>
    %1 = vector.multi_reduction <add>, %0, %cst [1] : vector<2x16x1280xf32> to vector<2x1280xf32>
    %c0_2 = arith.constant 0 : index
    %c0_3 = arith.constant 0 : index
    %2 = vector.load %arg2[%c0_2, %c0_3] : memref<1280x128xf32, #tpu.memory_space<vmem>>, vector<1280x128xf32>
    %cst_4 = arith.constant dense<0.000000e+00> : vector<2x128xf32>
    %3 = tpu.matmul %1, %2, %cst_4 {dimension_numbers = #tpu.dot_dimension_numbers<[1], [0], [0], [1], [0, 0, 1, 1], [], []>} : vector<2x1280xf32>, vector<1280x128xf32>, vector<2x128xf32> -> vector<2x128xf32>
    %c0_5 = arith.constant 0 : index
    %c0_6 = arith.constant 0 : index
    %4 = vector.load %arg3[%c0_5, %c0_6] : memref<1x128xf32, #tpu.memory_space<vmem>>, vector<1x128xf32>
    %5 = vector.broadcast %4 : vector<1x128xf32> to vector<2x128xf32>
    %6 = arith.addf %3, %5 : vector<2x128xf32>
    %c0_7 = arith.constant 0 : index
    %c0_8 = arith.constant 0 : index
    %7 = vector.load %arg4[%c0_7, %c0_8] : memref<2x128xf32, #tpu.memory_space<vmem>>, vector<2x128xf32>
    tpu.vector_store %arg4[%c0_7, %c0_8], %6 {strides = array<i32>} : memref<2x128xf32, #tpu.memory_space<vmem>>, vector<2x128xf32>,
    return
  }
  func.func @transform_0(%arg0: i32) -> (i32, i32, i32) {
    %c0_i32 = arith.constant 0 : i32
    %c0_i32_0 = arith.constant 0 : i32
    %c0_i32_1 = arith.constant 0 : i32
    return %arg0, %c0_i32, %c0_i32_0 : i32, i32, i32
  }
  func.func @transform_1(%arg0: i32) -> (i32, i32) {
    %c0_i32 = arith.constant 0 : i32
    %c0_i32_0 = arith.constant 0 : i32
    %c0_i32_1 = arith.constant 0 : i32
    return %c0_i32, %c0_i32_0 : i32, i32
  }
  func.func @transform_2(%arg0: i32) -> (i32, i32) {
    %c0_i32 = arith.constant 0 : i32
    %c0_i32_0 = arith.constant 0 : i32
    %c0_i32_1 = arith.constant 0 : i32
    return %c0_i32, %c0_i32_0 : i32, i32
  }
  func.func @transform_3(%arg0: i32) -> (i32, i32) {
    %c0_i32 = arith.constant 0 : i32
    %c0_i32_0 = arith.constant 0 : i32
    return %arg0, %c0_i32 : i32, i32
  }
}

</mosaic_0001>

<bundles_post_ra>
// kernel: tpu_custom_call.1
= control target key start
LH: loop header
LB: loop body
LE: loop exit
PB: predicated region body
PF: predicated region fallthrough
CT: control target
= control target key end

     0   :  { %8 = vsyncpa [#allocation3], 0  ;;  %s1451_s0 = inlined_call_operand.hbm [shape: f32[2,16,1280], index: 0, kind: input, shape index: {}]   ;;  %s1452_s1 = inlined_call_operand.hbm [shape: f32[1280,128], index: 1, kind: input, shape index: {}]   ;;  %s1453_s2 = inlined_call_operand.vmem [shape: f32[1,128], index: 2, kind: input, shape index: {}]   ;;  %s1454_s3 = inlined_call_operand.hbm [shape: f32[2,128], index: 3, kind: output, shape index: {}]  }
   0x1   :  { %9 = vsyncpa [#allocation6], 0 }
   0x2   :  { %10 = vsyncpa [#allocation4], 0  ;;  %s1213_s12 = smov [#allocation2]   ;;  %s1141_s16 = scalar_lea.hbm %s1451_s0, 5120 }
   0x3   :  { %s16_s13 = sshll.u32 %s1213_s12, 4  ;;  %p1142_p0 = scmp.ne.s32.totalorder %s1451_s0, %s1141_s16  ;;  %s17_s13 = int_to_ptr.vmem [resolvable:$true] %s16_s13 }
   0x4   :  { %p1145_p1 = scmp.lt.u32.totalorder %s1141_s16, %s1451_s0 }
   0x6   :  { %p1147_p2 = pnand %p1145_p1, %p1142_p0 }
   0x8   :  { %1150 = shalt.err (!%p1147_p2)
}
   0x9   :  { %s1151_s21 = scalar_lea.vmem %s17_s13, 5120  ;;  %p1156_p4 = scmp.lt.s32.totalorder %s17_s13, %s17_s13 }
   0xa   :  { %p1152_p3 = scmp.ne.s32.totalorder %s17_s13, %s1151_s21  ;;  %p1157_p5 = scmp.lt.s32.totalorder %s1151_s21, %s1151_s21 }
   0xc   :  { %p1158_p6 = por %p1157_p5, %p1156_p4 }
   0xe   :  { %p1159_p7 = pnand %p1158_p6, %p1152_p3 }
  0x10   :  { %1162 = shalt.err (!%p1159_p7)
}
  0x11   :  { %s1214_s22 = smov 1280   ;;  %s1215_s23 = smov 80  }
  0x12   :  { %22 = dma.hbm_to_vmem [thread:$0]  %s1451_s0, 5120, %s17_s13, [#allocation3], %s1214_s22, %s1214_s22, %s1215_s23  }
  0x13   :  { %s1216_s26 = smov [#allocation5]   ;;  %s1163_s30 = scalar_lea.hbm %s1452_s1, 20480 }
  0x14   :  { %s28_s27 = sshll.u32 %s1216_s26, 4  ;;  %p1164_p8 = scmp.ne.s32.totalorder %s1452_s1, %s1163_s30  ;;  %s29_s27 = int_to_ptr.vmem [resolvable:$true] %s28_s27 }
  0x15   :  { %p1167_p9 = scmp.lt.u32.totalorder %s1163_s30, %s1452_s1 }
  0x17   :  { %p1169_p10 = pnand %p1167_p9, %p1164_p8 }
  0x19   :  { %1172 = shalt.err (!%p1169_p10)
}
  0x1a   :  { %s1173_s8 = scalar_lea.vmem %s29_s27, 20480  ;;  %p1178_p12 = scmp.lt.s32.totalorder %s29_s27, %s29_s27 }
  0x1b   :  { %p1174_p11 = scmp.ne.s32.totalorder %s29_s27, %s1173_s8  ;;  %p1179_p13 = scmp.lt.s32.totalorder %s1173_s8, %s1173_s8 }
  0x1d   :  { %p1180_p0 = por %p1179_p13, %p1178_p12 }
  0x1f   :  { %p1181_p1 = pnand %p1180_p0, %p1174_p11 }
  0x21   :  { %1184 = shalt.err (!%p1181_p1)
}
  0x22   :  { %s1217_s0 = smov 128   ;;  %s1218_s9 = smov 8  }
  0x23   :  { %34 = dma.hbm_to_vmem [thread:$0]  %s1452_s1, 20480, %s29_s27, [#allocation6], %s1217_s0, %s1217_s0, %s1218_s9  }
  0x24   :  { %1207 = dma.done.wait [#allocation3], 5120  }
  0x25   :  { %1208 = vsyncadd [#allocation3], 4294962176 }
  0x26   :  { %1209 = dma.done.wait [#allocation6], 20480  }
  0x27   :  { %1210 = vsyncadd [#allocation6], 4294946816  ;;  %v239_v0 = vld [vmem:[#allocation5 + $0x80] sm:$0xff]  ;;  %v240_v1 = vld [vmem:[#allocation5 + $0x88] sm:$0xff]  ;;  %vm410_vm0 = vcmask 1041409   ;;  %s1219_s13 = smov [#allocation7]  }
  0x28   :  { %v223_v2 = vld [vmem:[#allocation5] sm:$0xff]  ;;  %v974_v3 = vpack.c.bf16 %v240_v1, %v239_v0  ;;  %v224_v4 = vld [vmem:[#allocation5 + $0x8] sm:$0xff]  ;;  %v241_v11 = vld [vmem:[#allocation5 + $0x90] sm:$0xff]  ;;  %s788_s14 = sshll.u32 %s1219_s13, 4  ;;  %s789_s14 = int_to_ptr.vmem [resolvable:$true] %s788_s14 }
  0x29   :  { %v271_v5 = vld [vmem:[#allocation5 + $0x180] sm:$0xff]  ;;  %v272_v6 = vld [vmem:[#allocation5 + $0x188] sm:$0xff]  ;;  %v976_v7 = vpack.c.bf16 %v224_v4, %v223_v2  ;;  %v242_v13 = vld [vmem:[#allocation5 + $0x98] sm:$0xff]  ;;  %p1190_p3 = scmp.lt.s32.totalorder %s789_s14, %s789_s14 }
  0x2a   :  { %v1006_v8 = vpack.c.bf16 %v272_v6, %v271_v5  ;;  %v255_v9 = vld [vmem:[#allocation5 + $0x100] sm:$0xff]  ;;  %v256_v10 = vld [vmem:[#allocation5 + $0x108] sm:$0xff]  ;;  %975 = vmatprep.subr.bf16.mxu0 %v974_v3  ;;  %v225_v14 = vld [vmem:[#allocation5 + $0x10] sm:$0xff]  ;;  %v978_v16 = vpack.c.bf16 %v242_v13, %v241_v11 }
  0x2b   :  { %v1008_v12 = vpack.c.bf16 %v256_v10, %v255_v9  ;;  %v226_v15 = vld [vmem:[#allocation5 + $0x18] sm:$0xff]  ;;  %977 = vmatpush3.bf16.msra.mxu0 %v976_v7  ;;  %v273_v18 = vld [vmem:[#allocation5 + $0x190] sm:$0xff]  ;;  %v243_v23 = vld [vmem:[#allocation5 + $0xa0] sm:$0xff] }
  0x2c   :  { %1007 = vmatprep.subr.bf16.mxu1 %v1006_v8  ;;  %v980_v17 = vpack.c.bf16 %v226_v15, %v225_v14  ;;  %v274_v19 = vld [vmem:[#allocation5 + $0x198] sm:$0xff]  ;;  %v257_v20 = vld [vmem:[#allocation5 + $0x110] sm:$0xff]  ;;  %v244_v24 = vld [vmem:[#allocation5 + $0xa8] sm:$0xff]  ;;  %979 = vmatprep.subr.bf16.mxu0 %v978_v16 }
  0x2d   :  { %1009 = vmatpush3.bf16.msra.mxu1 %v1008_v12  ;;  %v1010_v21 = vpack.c.bf16 %v274_v19, %v273_v18  ;;  %v258_v22 = vld [vmem:[#allocation5 + $0x118] sm:$0xff]  ;;  %v982_v26 = vpack.c.bf16 %v244_v24, %v243_v23  ;;  %v227_v27 = vld [vmem:[#allocation5 + $0x20] sm:$0xff]  ;;  %v228_v28 = vld [vmem:[#allocation5 + $0x28] sm:$0xff] }
  0x2e   :  { %v1012_v25 = vpack.c.bf16 %v258_v22, %v257_v20  ;;  %v275_v29 = vld [vmem:[#allocation5 + $0x1a0] sm:$0xff]  ;;  %v276_v30 = vld [vmem:[#allocation5 + $0x1a8] sm:$0xff]  ;;  %v984_v33 = vpack.c.bf16 %v228_v28, %v227_v27  ;;  %v245_v35 = vld [vmem:[#allocation5 + $0xb0] sm:$0xff] }
  0x2f   :  { %1011 = vmatprep.subr.bf16.mxu1 %v1010_v21  ;;  %v259_v31 = vld [vmem:[#allocation5 + $0x120] sm:$0xff]  ;;  %v260_v32 = vld [vmem:[#allocation5 + $0x128] sm:$0xff]  ;;  %981 = vmatpush3.bf16.msra.mxu0 %v980_v17  ;;  %v1014_v34 = vpack.c.bf16 %v276_v30, %v275_v29  ;;  %v246_v36 = vld [vmem:[#allocation5 + $0xb8] sm:$0xff] }
  0x30   :  { %v229_v37 = vld [vmem:[#allocation5 + $0x30] sm:$0xff]  ;;  %983 = vmatprep.subr.bf16.mxu0 %v982_v26  ;;  %v1016_v38 = vpack.c.bf16 %v260_v32, %v259_v31  ;;  %v986_v39 = vpack.c.bf16 %v246_v36, %v245_v35  ;;  %v230_v40 = vld [vmem:[#allocation5 + $0x38] sm:$0xff]  ;;  %v247_v46 = vld [vmem:[#allocation5 + $0xc0] sm:$0xff] }
  0x31   :  { %1013 = vmatpush3.bf16.msra.mxu1 %v1012_v25  ;;  %v277_v41 = vld [vmem:[#allocation5 + $0x1b0] sm:$0xff]  ;;  %v278_v42 = vld [vmem:[#allocation5 + $0x1b8] sm:$0xff]  ;;  %v248_v47 = vld [vmem:[#allocation5 + $0xc8] sm:$0xff]  ;;  %v988_v48 = vpack.c.bf16 %v230_v40, %v229_v37 }
  0x32   :  { %1015 = vmatprep.subr.bf16.mxu1 %v1014_v34  ;;  %v1018_v43 = vpack.c.bf16 %v278_v42, %v277_v41  ;;  %v261_v44 = vld [vmem:[#allocation5 + $0x130] sm:$0xff]  ;;  %v262_v45 = vld [vmem:[#allocation5 + $0x138] sm:$0xff]  ;;  %v279_v49 = vld [vmem:[#allocation5 + $0x1c0] sm:$0xff]  ;;  %v990_v52 = vpack.c.bf16 %v248_v47, %v247_v46 }
  0x33   :  { %985 = vmatpush3.bf16.msra.mxu0 %v984_v33  ;;  %v280_v50 = vld [vmem:[#allocation5 + $0x1c8] sm:$0xff]  ;;  %v1020_v51 = vpack.c.bf16 %v262_v45, %v261_v44  ;;  %v231_v53 = vld [vmem:[#allocation5 + $0x40] sm:$0xff]  ;;  %v249_v58 = vld [vmem:[#allocation5 + $0xd0] sm:$0xff] }
  0x34   :  { %987 = vmatprep.subr.bf16.mxu0 %v986_v39  ;;  %v232_v54 = vld [vmem:[#allocation5 + $0x48] sm:$0xff]  ;;  %v263_v55 = vld [vmem:[#allocation5 + $0x140] sm:$0xff]  ;;  %v1022_v56 = vpack.c.bf16 %v280_v50, %v279_v49  ;;  %v250_v59 = vld [vmem:[#allocation5 + $0xd8] sm:$0xff] }
  0x35   :  { %1017 = vmatpush3.bf16.msra.mxu1 %v1016_v38  ;;  %v264_v57 = vld [vmem:[#allocation5 + $0x148] sm:$0xff]  ;;  %v281_v60 = vld [vmem:[#allocation5 + $0x1d0] sm:$0xff]  ;;  %v282_v61 = vld [vmem:[#allocation5 + $0x1d8] sm:$0xff]  ;;  %v992_v62 = vpack.c.bf16 %v232_v54, %v231_v53  ;;  %v994_v3 = vpack.c.bf16 %v250_v59, %v249_v58 }
  0x36   :  { %1019 = vmatprep.subr.bf16.mxu1 %v1018_v43  ;;  %v233_v63 = vld [vmem:[#allocation5 + $0x50] sm:$0xff]  ;;  %v234_v0 = vld [vmem:[#allocation5 + $0x58] sm:$0xff]  ;;  %v1024_v2 = vpack.c.bf16 %v264_v57, %v263_v55  ;;  %v251_v5 = vld [vmem:[#allocation5 + $0xe0] sm:$0xff]  ;;  %v1026_v7 = vpack.c.bf16 %v282_v61, %v281_v60 }
  0x37   :  { %989 = vmatpush3.bf16.msra.mxu0 %v988_v48  ;;  %v265_v1 = vld [vmem:[#allocation5 + $0x150] sm:$0xff]  ;;  %v266_v4 = vld [vmem:[#allocation5 + $0x158] sm:$0xff]  ;;  %v252_v6 = vld [vmem:[#allocation5 + $0xe8] sm:$0xff]  ;;  %v996_v16 = vpack.c.bf16 %v234_v0, %v233_v63 }
  0x38   :  { %991 = vmatprep.subr.bf16.mxu0 %v990_v52  ;;  %v1264_v8 = vld [vmem:[#allocation5 + $0x60] sm:$0xff]  ;;  %v1266_v9 = vld [vmem:[#allocation5 + $0x68] sm:$0xff]  ;;  %v1272_v14 = vld [vmem:[#allocation5 + $0xf0] sm:$0xff]  ;;  %v1028_v22 = vpack.c.bf16 %v266_v4, %v265_v1  ;;  %v998_v23 = vpack.c.bf16 %v252_v6, %v251_v5 }
  0x39   :  { %1021 = vmatpush3.bf16.msra.mxu1 %v1020_v51  ;;  %v283_v10 = vld [vmem:[#allocation5 + $0x1e0] sm:$0xff]  ;;  %v284_v11 = vld [vmem:[#allocation5 + $0x1e8] sm:$0xff]  ;;  %v1274_v15 = vld [vmem:[#allocation5 + $0xf8] sm:$0xff]  ;;  %v1000_v33 = vpack.c.bf16 %v1266_v9, %v1264_v8 }
  0x3a   :  { %1023 = vmatprep.subr.bf16.mxu1 %v1022_v56  ;;  %v1268_v12 = vld [vmem:[#allocation5 + $0x160] sm:$0xff]  ;;  %v1270_v13 = vld [vmem:[#allocation5 + $0x168] sm:$0xff]  ;;  %v1276_v17 = vld [vmem:[#allocation5 + $0x70] sm:$0xff]  ;;  %v1030_v27 = vpack.c.bf16 %v284_v11, %v283_v10  ;;  %v1002_v35 = vpack.c.bf16 %v1274_v15, %v1272_v14 }
  0x3b   :  { %993 = vmatpush3.bf16.msra.mxu0 %v992_v62  ;;  %v1278_v18 = vld [vmem:[#allocation5 + $0x78] sm:$0xff]  ;;  %v1280_v19 = vld [vmem:[#allocation5 + $0x1f0] sm:$0xff]  ;;  %v44_v21 = vld [vmem:[#allocation2 + $0x8] sm:$0xff]  ;;  %v1032_v34 = vpack.c.bf16 %v1270_v13, %v1268_v12 }
  0x3c   :  { %v1282_v20 = vld [vmem:[#allocation5 + $0x1f8] sm:$0xff]  ;;  %995 = vmatprep.subr.bf16.mxu0 %v994_v3  ;;  %v64_v25 = vld [vmem:[#allocation2 + $0xa8] sm:$0xff]  ;;  %v1284_v30 = vld [vmem:[#allocation5 + $0x170] sm:$0xff]  ;;  %v1004_v46 = vpack.c.bf16 %v1278_v18, %v1276_v17 }
  0x3d   :  { %1025 = vmatpush3.bf16.msra.mxu1 %v1024_v2  ;;  %v54_v24 = vld [vmem:[#allocation2 + $0x58] sm:$0xff]  ;;  %v43_v32 = vld [vmem:[#allocation2] sm:$0xff]  ;;  %v53_v36 = vld [vmem:[#allocation2 + $0x50] sm:$0xff]  ;;  %v1034_v47 = vpack.c.bf16 %v1282_v20, %v1280_v19 }
  0x3e   :  { %v74_v26 = vld [vmem:[#allocation2 + $0xf8] sm:$0xff]  ;;  %1027 = vmatprep.subr.bf16.mxu1 %v1026_v7  ;;  %v90_v28 = vadd.f32 %v54_v24, %v44_v21  ;;  %v63_v37 = vld [vmem:[#allocation2 + $0xa0] sm:$0xff]  ;;  %v73_v38 = vld [vmem:[#allocation2 + $0xf0] sm:$0xff]  ;;  %v83_v41 = vadd.f32 %v53_v36, %v43_v32 }
  0x3f   :  { %v160_v29 = vadd.f32 %v74_v26, %v64_v25  ;;  %v1286_v31 = vld [vmem:[#allocation5 + $0x178] sm:$0xff]  ;;  %997 = vmatpush3.bf16.msra.mxu0 %v996_v16  ;;  %v153_v42 = vadd.f32 %v73_v38, %v63_v37  ;;  %v303_v43 = vld [vmem:[#allocation5 + $0x280] sm:$0xff]  ;;  %v304_v44 = vld [vmem:[#allocation5 + $0x288] sm:$0xff] }
  0x40   :  { %v91_v39 = vrot.slane %v90_v28, 4  ;;  %v46_v45 = vld [vmem:[#allocation2 + $0x18] sm:$0xff]  ;;  %999 = vmatprep.subr.bf16.mxu0 %v998_v23  ;;  %v1036_v48 = vpack.c.bf16 %v1286_v31, %v1284_v30  ;;  %v56_v49 = vld [vmem:[#allocation2 + $0x68] sm:$0xff]  ;;  %v84_v54 = vrot.slane %v83_v41, 4  ;;  %v1300_v56 = vld [vmem:[#allocation5 + $0x200] sm:$0xff]  ;;  %v1038_v59 = vpack.c.bf16 %v304_v44, %v303_v43 }
  0x41   :  { %v161_v40 = vrot.slane %v160_v29, 4  ;;  %1029 = vmatpush3.bf16.msra.mxu1 %v1028_v22  ;;  %v66_v50 = vld [vmem:[#allocation2 + $0xb8] sm:$0xff]  ;;  %v76_v51 = vld [vmem:[#allocation2 + $0x108] sm:$0xff]  ;;  %v154_v55 = vrot.slane %v153_v42, 4  ;;  %v45_v58 = vld [vmem:[#allocation2 + $0x10] sm:$0xff]  ;;  %v104_v60 = vadd.f32 %v56_v49, %v46_v45 }
  0x42   :  { %1031 = vmatprep.subr.bf16.mxu1 %v1030_v27  ;;  %v92_v52 = vadd.f32 %v91_v39, %v90_v28  ;;  %v1302_v57 = vld [vmem:[#allocation5 + $0x208] sm:$0xff]  ;;  %v174_v61 = vadd.f32 %v76_v51, %v66_v50  ;;  %v55_v63 = vld [vmem:[#allocation2 + $0x60] sm:$0xff]  ;;  %v65_v0 = vld [vmem:[#allocation2 + $0xb0] sm:$0xff]  ;;  %v85_v4 = vadd.f32 %v84_v54, %v83_v41 }
  0x43   :  { %v162_v53 = vadd.f32 %v161_v40, %v160_v29  ;;  %v1040_v62 = vpack.c.bf16 %v1302_v57, %v1300_v56  ;;  %v75_v1 = vld [vmem:[#allocation2 + $0x100] sm:$0xff]  ;;  %1001 = vmatpush3.bf16.msra.mxu0 %v1000_v33  ;;  %v155_v5 = vadd.f32 %v154_v55, %v153_v42  ;;  %v105_v6 = vrot.slane %v104_v60, 4  ;;  %v336_v27 = vld [vmem:[#allocation5 + $0x388] sm:$0xff]  ;;  %v305_v36 = vld [vmem:[#allocation5 + $0x290] sm:$0xff] }
  0x44   :  { %v93_v2 = vrot.slane %v92_v52, 2  ;;  %1003 = vmatprep.subr.bf16.mxu0 %v1002_v35  ;;  %v175_v7 = vrot.slane %v174_v61, 4  ;;  %v97_v8 = vadd.f32 %v55_v63, %v45_v58  ;;  %v167_v9 = vadd.f32 %v75_v1, %v65_v0  ;;  %v335_v26 = vld [vmem:[#allocation5 + $0x380] sm:$0xff]  ;;  %v306_v37 = vld [vmem:[#allocation5 + $0x298] sm:$0xff]  ;;  %v1311_v1 = vld [vmem:[#allocation5 + $0x310] sm:$0xff] }
  0x45   :  { %v163_v3 = vrot.slane %v162_v53, 2  ;;  %1033 = vmatpush3.bf16.msra.mxu1 %v1032_v34  ;;  %v86_v12 = vrot.slane %v85_v4, 2  ;;  %v156_v13 = vrot.slane %v155_v5, 2  ;;  %v106_v14 = vadd.f32 %v105_v6, %v104_v60  ;;  %v319_v42 = vld [vmem:[#allocation5 + $0x300] sm:$0xff]  ;;  %v290_v49 = vld [vmem:[#allocation5 + $0x218] sm:$0xff]  ;;  %v337_v60 = vld [vmem:[#allocation5 + $0x390] sm:$0xff] }
  0x46   :  { %1035 = vmatprep.subr.bf16.mxu1 %v1034_v47  ;;  %v94_v10 = vadd.f32 %v93_v2, %v92_v52  ;;  %v176_v15 = vadd.f32 %v175_v7, %v174_v61  ;;  %v98_v16 = vrot.slane %v97_v8, 4  ;;  %v168_v17 = vrot.slane %v167_v9, 4  ;;  %v320_v47 = vld [vmem:[#allocation5 + $0x308] sm:$0xff]  ;;  %v307_v52 = vld [vmem:[#allocation5 + $0x2a0] sm:$0xff]  ;;  %v338_v61 = vld [vmem:[#allocation5 + $0x398] sm:$0xff] }
  0x47   :  { %v164_v11 = vadd.f32 %v163_v3, %v162_v53  ;;  %1005 = vmatpush3.bf16.msra.mxu0 %v1004_v46  ;;  %v87_v20 = vadd.f32 %v86_v12, %v85_v4  ;;  %v157_v21 = vadd.f32 %v156_v13, %v155_v5  ;;  %v107_v22 = vrot.slane %v106_v14, 2  ;;  %v308_v53 = vld [vmem:[#allocation5 + $0x2a8] sm:$0xff]  ;;  %v1313_v2 = vld [vmem:[#allocation5 + $0x318] sm:$0xff]  ;;  %v291_v3 = vld [vmem:[#allocation5 + $0x220] sm:$0xff] }
  0x48   :  { %v95_v18 = vrot.slane %v94_v10, 1  ;;  %1039 = vmatprep.subr.bf16.mxu0 %v1038_v59  ;;  %v177_v23 = vrot.slane %v176_v15, 2  ;;  %v99_v24 = vadd.f32 %v98_v16, %v97_v8  ;;  %v169_v25 = vadd.f32 %v168_v17, %v167_v9  ;;  %v292_v4 = vld [vmem:[#allocation5 + $0x228] sm:$0xff]  ;;  %v1316_v9 = vld [vmem:[#allocation5 + $0x3a0] sm:$0xff]  ;;  %v310_v56 = vld [vmem:[#allocation5 + $0x2b8] sm:$0xff] }
  0x49   :  { %v165_v19 = vrot.slane %v164_v11, 1  ;;  %1037 = vmatpush3.bf16.msra.mxu1 %v1036_v48  ;;  %v88_v30 = vrot.slane %v87_v20, 1  ;;  %v158_v31 = vrot.slane %v157_v21, 1  ;;  %v108_v32 = vadd.f32 %v107_v22, %v106_v14  ;;  %v289_v48 = vld [vmem:[#allocation5 + $0x210] sm:$0xff]  ;;  %v1320_v12 = vld [vmem:[#allocation5 + $0x328] sm:$0xff]  ;;  %v1324_v14 = vld [vmem:[#allocation5 + $0x238] sm:$0xff] }
  0x4a   :  { %v96_v28 = vadd.f32 %v95_v18, %v94_v10  ;;  %v178_v33 = vadd.f32 %v177_v23, %v176_v15  ;;  %v100_v34 = vrot.slane %v99_v24, 2  ;;  %v170_v35 = vrot.slane %v169_v25, 2  ;;  %v340_v10 = vld [vmem:[#allocation5 + $0x3a8] sm:$0xff]  ;;  %v1322_v13 = vld [vmem:[#allocation5 + $0x230] sm:$0xff]  ;;  %v1328_v16 = vld [vmem:[#allocation5 + $0x3b8] sm:$0xff] }
  0x4b   :  { %v166_v29 = vadd.f32 %v165_v19, %v164_v11  ;;  %v89_v39 = vadd.f32 %v88_v30, %v87_v20  ;;  %v159_v40 = vadd.f32 %v158_v31, %v157_v21  ;;  %v1070_v41 = vpack.c.bf16 %v336_v27, %v335_v26  ;;  %v309_v11 = vld [vmem:[#allocation5 + $0x2b0] sm:$0xff]  ;;  %v1333_v19 = vld [vmem:[#allocation5 + $0x338] sm:$0xff]  ;;  %v1335_v20 = vld [vmem:[#allocation5 + $0x2c0] sm:$0xff] }
  0x4c   :  { %v109_v43 = vrot.slane %v108_v32, 1  ;;  %v179_v44 = vrot.slane %v178_v33, 1  ;;  %v101_v45 = vadd.f32 %v100_v34, %v99_v24  ;;  %v171_v46 = vadd.f32 %v170_v35, %v169_v25  ;;  %v1326_v15 = vld [vmem:[#allocation5 + $0x3b0] sm:$0xff]  ;;  %v1337_v21 = vld [vmem:[#allocation5 + $0x2c8] sm:$0xff]  ;;  %v1339_v22 = vld [vmem:[#allocation5 + $0x240] sm:$0xff] }
  0x4d   :  { %v412_v38 = vsel %vm410_vm0, %v166_v29, %v96_v28  ;;  %v411_v50 = vsel %vm410_vm0, %v159_v40, %v89_v39  ;;  %1071 = vmatprep.subr.bf16.mxu1 %v1070_v41  ;;  %v1042_v51 = vpack.c.bf16 %v306_v37, %v305_v36  ;;  %v1072_v63 = vpack.c.bf16 %v320_v47, %v319_v42  ;;  %v1331_v18 = vld [vmem:[#allocation5 + $0x330] sm:$0xff]  ;;  %v1341_v23 = vld [vmem:[#allocation5 + $0x248] sm:$0xff]  ;;  %v1343_v25 = vld [vmem:[#allocation5 + $0x3c0] sm:$0xff] }
  0x4e   :  { %495 = vmatprep.mubr.f32.mxu0 %v412_v38  ;;  %v110_v54 = vadd.f32 %v109_v43, %v108_v32  ;;  %v180_v55 = vadd.f32 %v179_v44, %v178_v33  ;;  %v102_v58 = vrot.slane %v101_v45, 1  ;;  %v172_v59 = vrot.slane %v171_v46, 1  ;;  %v1345_v26 = vld [vmem:[#allocation5 + $0x3c8] sm:$0xff]  ;;  %v1347_v27 = vld [vmem:[#allocation5 + $0x340] sm:$0xff]  ;;  %v1353_v31 = vld [vmem:[#allocation5 + $0x2d0] sm:$0xff] }
  0x4f   :  { %496 = vmatmul.mubr.f32.vlgmr.msra.gmra.mrb[0].mxu0 %v411_v50  ;;  %v1044_v0 = vpack.c.bf16 %v290_v49, %v289_v48  ;;  %v1046_v8 = vpack.c.bf16 %v308_v53, %v307_v52  ;;  %v1074_v57 = vpack.c.bf16 %v338_v61, %v337_v60  ;;  %v1048_v24 = vpack.c.bf16 %v292_v4, %v291_v3  ;;  %v1349_v28 = vld [vmem:[#allocation5 + $0x348] sm:$0xff]  ;;  %v1355_v32 = vld [vmem:[#allocation5 + $0x2d8] sm:$0xff]  ;;  %v1357_v33 = vld [vmem:[#allocation5 + $0x250] sm:$0xff] }
  0x50   :  { %1041 = vmatpush3.bf16.msra.mxu0 %v1040_v62  ;;  %v414_v5 = vsel %vm410_vm0, %v180_v55, %v110_v54  ;;  %v103_v6 = vadd.f32 %v102_v58, %v101_v45  ;;  %v173_v7 = vadd.f32 %v172_v59, %v171_v46  ;;  %v1318_v62 = vld [vmem:[#allocation5 + $0x320] sm:$0xff]  ;;  %v1076_v29 = vpack.c.bf16 %v1313_v2, %v1311_v1  ;;  %v1359_v34 = vld [vmem:[#allocation5 + $0x258] sm:$0xff]  ;;  %v1362_v36 = vld [vmem:[#allocation5 + $0x3d0] sm:$0xff] }
  0x51   :  { %1043 = vmatprep.subr.bf16.mxu0 %v1042_v51  ;;  %565 = vmatprep.mubr.f32.mxu1 %v414_v5  ;;  %v1050_v30 = vpack.c.bf16 %v310_v56, %v309_v11  ;;  %v1078_v35 = vpack.c.bf16 %v340_v10, %v1316_v9  ;;  %v1364_v37 = vld [vmem:[#allocation5 + $0x3d8] sm:$0xff]  ;;  %v1366_v38 = vld [vmem:[#allocation5 + $0x350] sm:$0xff]  ;;  %v1080_v40 = vpack.c.bf16 %v1320_v12, %v1318_v62  ;;  %v1376_v43 = vld [vmem:[#allocation5 + $0x2e0] sm:$0xff] }
  0x52   :  { %v413_v17 = vsel %vm410_vm0, %v173_v7, %v103_v6  ;;  %v1368_v39 = vld [vmem:[#allocation5 + $0x358] sm:$0xff]  ;;  %v1052_v41 = vpack.c.bf16 %v1324_v14, %v1322_v13  ;;  %v1082_v42 = vpack.c.bf16 %v1328_v16, %v1326_v15  ;;  %v1378_v44 = vld [vmem:[#allocation5 + $0x2e8] sm:$0xff]  ;;  %v1084_v47 = vpack.c.bf16 %v1333_v19, %v1331_v18  ;;  %v1386_v50 = vld [vmem:[#allocation5 + $0x260] sm:$0xff] }
  0x53   :  { %566 = vmatmul.mubr.f32.vlgmr.msra.gmra.mrb[0].mxu1 %v413_v17  ;;  %v48_v45 = vld [vmem:[#allocation2 + $0x28] sm:$0xff]  ;;  %v58_v46 = vld [vmem:[#allocation2 + $0x78] sm:$0xff]  ;;  %v1054_v48 = vpack.c.bf16 %v1337_v21, %v1335_v20  ;;  %v1056_v49 = vpack.c.bf16 %v1341_v23, %v1339_v22  ;;  %v1086_v54 = vpack.c.bf16 %v1345_v26, %v1343_v25  ;;  %v1088_v55 = vpack.c.bf16 %v1349_v28, %v1347_v27  ;;  %v47_v60 = vld [vmem:[#allocation2 + $0x20] sm:$0xff] }
  0x54   :  { %1045 = vmatpush3.bf16.msra.mxu0 %v1044_v0  ;;  %1073 = vmatpush3.bf16.msra.mxu1 %v1072_v63  ;;  %v68_v51 = vld [vmem:[#allocation2 + $0xc8] sm:$0xff]  ;;  %v78_v52 = vld [vmem:[#allocation2 + $0x118] sm:$0xff]  ;;  %v118_v53 = vadd.f32 %v58_v46, %v48_v45  ;;  %v57_v61 = vld [vmem:[#allocation2 + $0x70] sm:$0xff]  ;;  %v1058_v63 = vpack.c.bf16 %v1355_v32, %v1353_v31  ;;  %v1060_v0 = vpack.c.bf16 %v1359_v34, %v1357_v33 }
  0x55   :  { %1047 = vmatprep.subr.bf16.mxu0 %v1046_v8  ;;  %1075 = vmatprep.subr.bf16.mxu1 %v1074_v57  ;;  %v1392_v58 = vld [vmem:[#allocation5 + $0x268] sm:$0xff]  ;;  %v188_v59 = vadd.f32 %v78_v52, %v68_v51  ;;  %v1398_v1 = vld [vmem:[#allocation5 + $0x2f0] sm:$0xff]  ;;  %v67_v3 = vld [vmem:[#allocation2 + $0xc0] sm:$0xff]  ;;  %v111_v5 = vadd.f32 %v57_v61, %v47_v60  ;;  %v1090_v6 = vpack.c.bf16 %v1364_v37, %v1362_v36 }
  0x56   :  { %v119_v2 = vrot.slane %v118_v53, 4  ;;  %v77_v4 = vld [vmem:[#allocation2 + $0x110] sm:$0xff]  ;;  %v1092_v7 = vpack.c.bf16 %v1368_v39, %v1366_v38  ;;  %v1404_v8 = vld [vmem:[#allocation5 + $0x2f8] sm:$0xff]  ;;  %v60_v56 = vld [vmem:[#allocation2 + $0x88] sm:$0xff]  ;;  %v1062_v57 = vpack.c.bf16 %v1378_v44, %v1376_v43  ;;  %v1064_v16 = vpack.c.bf16 %v1392_v58, %v1386_v50 }
  0x57   :  { %v189_v9 = vrot.slane %v188_v59, 4  ;;  %v181_v10 = vadd.f32 %v77_v4, %v67_v3  ;;  %v50_v11 = vld [vmem:[#allocation2 + $0x38] sm:$0xff]  ;;  %v112_v12 = vrot.slane %v111_v5, 4  ;;  %v80_v14 = vld [vmem:[#allocation2 + $0x128] sm:$0xff]  ;;  %v49_v20 = vld [vmem:[#allocation2 + $0x30] sm:$0xff]  ;;  %v1066_v22 = vpack.c.bf16 %v1404_v8, %v1398_v1 }
  0x58   :  { %1049 = vmatpush3.bf16.msra.mxu0 %v1048_v24  ;;  %1077 = vmatpush3.bf16.msra.mxu1 %v1076_v29  ;;  %v120_v62 = vadd.f32 %v119_v2, %v118_v53  ;;  %v70_v13 = vld [vmem:[#allocation2 + $0xd8] sm:$0xff]  ;;  %v132_v15 = vadd.f32 %v60_v56, %v50_v11  ;;  %v59_v21 = vld [vmem:[#allocation2 + $0x80] sm:$0xff]  ;;  %v69_v26 = vld [vmem:[#allocation2 + $0xd0] sm:$0xff] }
  0x59   :  { %1051 = vmatprep.subr.bf16.mxu0 %v1050_v30  ;;  %1079 = vmatprep.subr.bf16.mxu1 %v1078_v35  ;;  %v190_v17 = vadd.f32 %v189_v9, %v188_v59  ;;  %v182_v18 = vrot.slane %v181_v10, 4  ;;  %v202_v19 = vadd.f32 %v80_v14, %v70_v13  ;;  %v113_v24 = vadd.f32 %v112_v12, %v111_v5  ;;  %v79_v29 = vld [vmem:[#allocation2 + $0x120] sm:$0xff]  ;;  %v348_v61 = vld [vmem:[#allocation5 + $0x3e8] sm:$0xff]  ;;  %v301_v2 = vld [vmem:[#allocation5 + $0x270] sm:$0xff] }
  0x5a   :  { %v121_v23 = vrot.slane %v120_v62, 2  ;;  %v133_v25 = vrot.slane %v132_v15, 4  ;;  %v125_v35 = vadd.f32 %v59_v21, %v49_v20  ;;  %v195_v44 = vadd.f32 %v79_v29, %v69_v26  ;;  %v347_v51 = vld [vmem:[#allocation5 + $0x3e0] sm:$0xff]  ;;  %v302_v3 = vld [vmem:[#allocation5 + $0x278] sm:$0xff]  ;;  %v332_v34 = vld [vmem:[#allocation5 + $0x368] sm:$0xff] }
  0x5b   :  { %v191_v30 = vrot.slane %v190_v17, 2  ;;  %v183_v31 = vadd.f32 %v182_v18, %v181_v10  ;;  %v203_v32 = vrot.slane %v202_v19, 4  ;;  %v331_v11 = vld [vmem:[#allocation5 + $0x360] sm:$0xff]  ;;  %v1094_v33 = vpack.c.bf16 %v348_v61, %v347_v51  ;;  %v350_v27 = vld [vmem:[#allocation5 + $0x3f8] sm:$0xff]  ;;  %v333_v36 = vld [vmem:[#allocation5 + $0x370] sm:$0xff] }
  0x5c   :  { %1053 = vmatpush3.bf16.msra.mxu0 %v1052_v41  ;;  %1081 = vmatpush3.bf16.msra.mxu1 %v1080_v40  ;;  %v122_v40 = vadd.f32 %v121_v23, %v120_v62  ;;  %v114_v41 = vrot.slane %v113_v24, 2  ;;  %v134_v43 = vadd.f32 %v133_v25, %v132_v15  ;;  %v196_v60 = vrot.slane %v195_v44, 4  ;;  %v367_v14 = vld [vmem:[#allocation5 + $0x480] sm:$0xff]  ;;  %v368_v15 = vld [vmem:[#allocation5 + $0x488] sm:$0xff]  ;;  %v62_v39 = vld [vmem:[#allocation2 + $0x98] sm:$0xff] }
  0x5d   :  { %1055 = vmatprep.subr.bf16.mxu0 %v1054_v48  ;;  %1083 = vmatprep.subr.bf16.mxu1 %v1082_v42  ;;  %v192_v42 = vadd.f32 %v191_v30, %v190_v17  ;;  %v184_v45 = vrot.slane %v183_v31, 2  ;;  %v204_v46 = vadd.f32 %v203_v32, %v202_v19  ;;  %v126_v48 = vrot.slane %v125_v35, 4  ;;  %v349_v19 = vld [vmem:[#allocation5 + $0x3f0] sm:$0xff]  ;;  %v351_v29 = vld [vmem:[#allocation5 + $0x400] sm:$0xff]  ;;  %v352_v50 = vld [vmem:[#allocation5 + $0x408] sm:$0xff] }
  0x5e   :  { %v123_v52 = vrot.slane %v122_v40, 1  ;;  %v115_v53 = vadd.f32 %v114_v41, %v113_v24  ;;  %v135_v59 = vrot.slane %v134_v43, 2  ;;  %v1096_v23 = vpack.c.bf16 %v332_v34, %v331_v11  ;;  %v334_v24 = vld [vmem:[#allocation5 + $0x378] sm:$0xff]  ;;  %v353_v41 = vld [vmem:[#allocation5 + $0x410] sm:$0xff]  ;;  %v71_v51 = vld [vmem:[#allocation2 + $0xe0] sm:$0xff] }
  0x5f   :  { %v185_v4 = vadd.f32 %v184_v45, %v183_v31  ;;  %v205_v5 = vrot.slane %v204_v46, 2  ;;  %v127_v9 = vadd.f32 %v126_v48, %v125_v35  ;;  %v1102_v25 = vpack.c.bf16 %v368_v15, %v367_v14  ;;  %v369_v31 = vld [vmem:[#allocation5 + $0x490] sm:$0xff]  ;;  %v370_v32 = vld [vmem:[#allocation5 + $0x498] sm:$0xff]  ;;  %v52_v35 = vld [vmem:[#allocation2 + $0x48] sm:$0xff] }
  0x60   :  { %1057 = vmatpush3.bf16.msra.mxu0 %v1056_v49  ;;  %1085 = vmatpush3.bf16.msra.mxu1 %v1084_v47  ;;  %v193_v49 = vrot.slane %v192_v42, 1  ;;  %v124_v47 = vadd.f32 %v123_v52, %v122_v40  ;;  %v136_v10 = vadd.f32 %v135_v59, %v134_v43  ;;  %v82_v40 = vld [vmem:[#allocation2 + $0x138] sm:$0xff]  ;;  %v1100_v1 = vpack.c.bf16 %v334_v24, %v333_v36  ;;  %v61_v48 = vld [vmem:[#allocation2 + $0x90] sm:$0xff]  ;;  %v372_v59 = vld [vmem:[#allocation5 + $0x4a8] sm:$0xff] }
  0x61   :  { %1059 = vmatprep.subr.bf16.mxu0 %v1058_v63  ;;  %1087 = vmatprep.subr.bf16.mxu1 %v1086_v54  ;;  %v116_v63 = vrot.slane %v115_v53, 1  ;;  %v197_v54 = vadd.f32 %v196_v60, %v195_v44  ;;  %v186_v62 = vrot.slane %v185_v4, 1  ;;  %v206_v12 = vadd.f32 %v205_v5, %v204_v46  ;;  %v354_v43 = vld [vmem:[#allocation5 + $0x418] sm:$0xff]  ;;  %v51_v44 = vld [vmem:[#allocation2 + $0x40] sm:$0xff]  ;;  %v81_v52 = vld [vmem:[#allocation2 + $0x130] sm:$0xff] }
  0x62   :  { %v194_v56 = vadd.f32 %v193_v49, %v192_v42  ;;  %v128_v13 = vrot.slane %v127_v9, 2  ;;  %v137_v17 = vrot.slane %v136_v10, 1  ;;  %v1106_v46 = vpack.c.bf16 %v370_v32, %v369_v31  ;;  %v356_v49 = vld [vmem:[#allocation5 + $0x428] sm:$0xff]  ;;  %v374_v11 = vld [vmem:[#allocation5 + $0x4b8] sm:$0xff]  ;;  %v377_v24 = vld [vmem:[#allocation5 + $0x4d0] sm:$0xff] }
  0x63   :  { %v198_v18 = vrot.slane %v197_v54, 2  ;;  %v187_v37 = vadd.f32 %v186_v62, %v185_v4  ;;  %v146_v60 = vadd.f32 %v62_v39, %v52_v35  ;;  %v361_v32 = vld [vmem:[#allocation5 + $0x450] sm:$0xff]  ;;  %v362_v35 = vld [vmem:[#allocation5 + $0x458] sm:$0xff]  ;;  %v380_v39 = vld [vmem:[#allocation5 + $0x4e8] sm:$0xff] }
  0x64   :  { %1061 = vmatpush3.bf16.msra.mxu0 %v1060_v0  ;;  %1089 = vmatpush3.bf16.msra.mxu1 %v1088_v55  ;;  %v1068_v0 = vpack.c.bf16 %v302_v3, %v301_v2  ;;  %v416_v28 = vsel %vm410_vm0, %v194_v56, %v124_v47  ;;  %v117_v55 = vadd.f32 %v116_v63, %v115_v53  ;;  %v371_v53 = vld [vmem:[#allocation5 + $0x4a0] sm:$0xff] }
  0x65   :  { %1063 = vmatprep.subr.bf16.mxu0 %v1062_v57  ;;  %1091 = vmatprep.subr.bf16.mxu1 %v1090_v6  ;;  %v207_v57 = vrot.slane %v206_v12, 1  ;;  %v129_v20 = vadd.f32 %v128_v13, %v127_v9  ;;  %v138_v6 = vadd.f32 %v137_v17, %v136_v10  ;;  %v199_v21 = vadd.f32 %v198_v18, %v197_v54  ;;  %v355_v3 = vld [vmem:[#allocation5 + $0x420] sm:$0xff]  ;;  %v373_v54 = vld [vmem:[#allocation5 + $0x4b0] sm:$0xff] }
  0x66   :  { %635 = vmatprep.mubr.f32.mxu0 %v416_v28  ;;  %v415_v8 = vsel %vm410_vm0, %v187_v37, %v117_v55  ;;  %v1108_v2 = vpack.c.bf16 %v354_v43, %v353_v41  ;;  %v147_v4 = vrot.slane %v146_v60, 4  ;;  %v139_v9 = vadd.f32 %v61_v48, %v51_v44  ;;  %v357_v13 = vld [vmem:[#allocation5 + $0x430] sm:$0xff]  ;;  %v375_v18 = vld [vmem:[#allocation5 + $0x4c0] sm:$0xff]  ;;  %v364_v41 = vld [vmem:[#allocation5 + $0x468] sm:$0xff] }
  0x67   :  { %v208_v26 = vadd.f32 %v207_v57, %v206_v12  ;;  %v130_v58 = vrot.slane %v129_v20, 1  ;;  %v200_v30 = vrot.slane %v199_v21, 1  ;;  %v209_v47 = vadd.f32 %v81_v52, %v71_v51  ;;  %v381_v43 = vld [vmem:[#allocation5 + $0x4f0] sm:$0xff]  ;;  %v382_v44 = vld [vmem:[#allocation5 + $0x4f8] sm:$0xff] }
  0x68   :  { %1065 = vmatpush3.bf16.msra.mxu0 %v1064_v16  ;;  %1093 = vmatpush3.bf16.msra.mxu1 %v1092_v7  ;;  %v1098_v16 = vpack.c.bf16 %v350_v27, %v349_v19  ;;  %v72_v7 = vld [vmem:[#allocation2 + $0xe8] sm:$0xff]  ;;  %v1110_v10 = vpack.c.bf16 %v372_v59, %v371_v53  ;;  %v148_v56 = vadd.f32 %v147_v4, %v146_v60  ;;  %v140_v14 = vrot.slane %v139_v9, 4  ;;  %v365_v51 = vld [vmem:[#allocation5 + $0x470] sm:$0xff]  ;;  %v366_v52 = vld [vmem:[#allocation5 + $0x478] sm:$0xff] }
  0x69   :  { %1067 = vmatprep.subr.bf16.mxu0 %v1066_v22  ;;  %1095 = vmatprep.subr.bf16.mxu1 %v1094_v33  ;;  %v418_v38 = vsel %vm410_vm0, %v208_v26, %v138_v6  ;;  %v1104_v22 = vpack.c.bf16 %v352_v50, %v351_v29  ;;  %v131_v42 = vadd.f32 %v130_v58, %v129_v20  ;;  %v358_v33 = vld [vmem:[#allocation5 + $0x438] sm:$0xff]  ;;  %v210_v15 = vrot.slane %v209_v47, 4  ;;  %v376_v19 = vld [vmem:[#allocation5 + $0x4c8] sm:$0xff] }
  0x6a   :  { %705 = vmatprep.mubr.f32.mxu1 %v418_v38  ;;  %v201_v45 = vadd.f32 %v200_v30, %v199_v21  ;;  %v216_v61 = vadd.f32 %v82_v40, %v72_v7  ;;  %v1112_v12 = vpack.c.bf16 %v356_v49, %v355_v3  ;;  %v149_v34 = vrot.slane %v148_v56, 2  ;;  %v359_v21 = vld [vmem:[#allocation5 + $0x440] sm:$0xff] }
  0x6b   :  { %v1114_v17 = vpack.c.bf16 %v374_v11, %v373_v54  ;;  %v1116_v55 = vpack.c.bf16 %v358_v33, %v357_v13  ;;  %v141_v36 = vadd.f32 %v140_v14, %v139_v9  ;;  %v211_v37 = vadd.f32 %v210_v15, %v209_v47  ;;  %v379_v38 = vld [vmem:[#allocation5 + $0x4e0] sm:$0xff] }
  0x6c   :  { %1069 = vmatpush3.bf16.msra.mxu0 %v1068_v0  ;;  %1097 = vmatpush3.bf16.msra.mxu1 %v1096_v23  ;;  %v217_v5 = vrot.slane %v216_v61, 4  ;;  %v417_v63 = vsel %vm410_vm0, %v201_v45, %v131_v42  ;;  %v150_v27 = vadd.f32 %v149_v34, %v148_v56  ;;  %v1118_v6 = vpack.c.bf16 %v376_v19, %v375_v18  ;;  %v360_v23 = vld [vmem:[#allocation5 + $0x448] sm:$0xff]  ;;  %v798_v49 = vld [vmem:[%s1453_s2] ss:$0 sm:$0xff]  ;;  %s1185_s2 = scalar_lea.vmem %s789_s14, 32 }
  0x6d   :  { %1103 = vmatprep.subr.bf16.mxu0 %v1102_v25  ;;  %1099 = vmatprep.subr.bf16.mxu1 %v1098_v16  ;;  %v378_v25 = vld [vmem:[#allocation5 + $0x4d8] sm:$0xff]  ;;  %v1120_v50 = vpack.c.bf16 %v360_v23, %v359_v21  ;;  %v142_v16 = vrot.slane %v141_v36, 2  ;;  %v212_v30 = vrot.slane %v211_v37, 2  ;;  %v1124_v7 = vpack.c.bf16 %v362_v35, %v361_v32  ;;  %p1186_p2 = scmp.ne.s32.totalorder %s789_s14, %s1185_s2  ;;  %p1191_p4 = scmp.lt.s32.totalorder %s1185_s2, %s1185_s2 }
  0x6e   :  { %v218_v62 = vadd.f32 %v217_v5, %v216_v61  ;;  %v151_v57 = vrot.slane %v150_v27, 1  ;;  %v1122_v31 = vpack.c.bf16 %v378_v25, %v377_v24  ;;  %v1130_v48 = vpack.c.bf16 %v382_v44, %v381_v43 }
  0x6f   :  { %636 = vmatmul.mubr.f32.vlgmr.msra.gmra.mrb[2].mxu0 %v415_v8  ;;  %v143_v40 = vadd.f32 %v142_v16, %v141_v36  ;;  %v1126_v8 = vpack.c.bf16 %v380_v39, %v379_v38  ;;  %v1132_v53 = vpack.c.bf16 %v366_v52, %v365_v51  ;;  %p1192_p5 = por %p1191_p4, %p1190_p3 }
  0x70   :  { %1105 = vmatpush3.bf16.msra.mxu0 %v1104_v22  ;;  %1101 = vmatpush3.bf16.msra.mxu1 %v1100_v1  ;;  %v219_v0 = vrot.slane %v218_v62, 2  ;;  %v152_v26 = vadd.f32 %v151_v57, %v150_v27  ;;  %v213_v1 = vadd.f32 %v212_v30, %v211_v37  ;;  %v363_v22 = vld [vmem:[#allocation5 + $0x460] sm:$0xff] }
  0x71   :  { %1107 = vmatprep.subr.bf16.mxu0 %v1106_v46  ;;  %v1128_v42 = vpack.c.bf16 %v364_v41, %v363_v22  ;;  %v144_v45 = vrot.slane %v143_v40, 1  ;;  %p1193_p6 = pnand %p1192_p5, %p1186_p2 }
  0x72   :  { %v220_v28 = vadd.f32 %v219_v0, %v218_v62  ;;  %v214_v46 = vrot.slane %v213_v1, 1 }
  0x73   :  { %706 = vmatmul.mubr.f32.vlgmr.msra.gmra.mrb[2].mxu1 %v417_v63  ;;  %v145_v59 = vadd.f32 %v144_v45, %v143_v40 }
  0x74   :  { %1109 = vmatpush3.bf16.msra.mxu0 %v1108_v2  ;;  %v221_v20 = vrot.slane %v220_v28, 1  ;;  %v215_v60 = vadd.f32 %v214_v46, %v213_v1 }
  0x75   :  { %1111 = vmatprep.subr.bf16.mxu0 %v1110_v10 }
  0x76   :  { %v222_v29 = vadd.f32 %v221_v20, %v220_v28  ;;  %v419_v61 = vsel %vm410_vm0, %v215_v60, %v145_v59 }
  0x78   :  { %1113 = vmatpush3.bf16.msra.mxu0 %v1112_v12  ;;  %v420_v58 = vsel %vm410_vm0, %v222_v29, %v152_v26 }
  0x79   :  { %1115 = vmatprep.subr.bf16.mxu0 %v1114_v17  ;;  %775 = vmatprep.mubr.f32.mxu0 %v420_v58 }
  0x7c   :  { %1117 = vmatpush3.bf16.msra.mxu0 %v1116_v55 }
  0x7d   :  { %1119 = vmatprep.subr.bf16.mxu0 %v1118_v6 }
  0x80   :  { %1121 = vmatpush3.bf16.msra.mxu0 %v1120_v50 }
  0x81   :  { %1123 = vmatprep.subr.bf16.mxu0 %v1122_v31 }
  0x84   :  { %1125 = vmatpush3.bf16.msra.mxu0 %v1124_v7 }
  0x85   :  { %1127 = vmatprep.subr.bf16.mxu0 %v1126_v8 }
  0x88   :  { %1129 = vmatpush3.bf16.msra.mxu0 %v1128_v42 }
  0x89   :  { %1131 = vmatprep.subr.bf16.mxu0 %v1130_v48 }
  0x8c   :  { %1133 = vmatpush3.bf16.msra.mxu0 %v1132_v53 }
  0x8f   :  { %776 = vmatmul.mubr.f32.vlgmr.msra.gmra.mrb[4].mxu0 %v419_v61 }
 0x122   :  { %v831_v2 = vpop.f32.mrb[0].mxu0 }
 0x123   :  { %v832_v3 = vpop.f32.mrb[1].mxu0 }
 0x124   :  { %v833_v4 = vadd.f32 %v832_v3, %v831_v2 }
 0x126   :  { %v498_v5 = vadd.f32 %v833_v4, %v798_v49  ;;  %v866_v9 = vpop.f32.mrb[0].mxu1 }
 0x127   :  { %v867_v47 = vpop.f32.mrb[1].mxu1 }
 0x128   :  { %v868_v63 = vadd.f32 %v867_v47, %v866_v9 }
 0x12a   :  { %v568_v10 = vadd.f32 %v868_v63, %v498_v5 }
 0x142   :  { %v901_v54 = vpop.f32.mrb[2].mxu0 }
 0x143   :  { %v902_v11 = vpop.f32.mrb[3].mxu0 }
 0x144   :  { %v903_v56 = vadd.f32 %v902_v11, %v901_v54 }
 0x146   :  { %v638_v62 = vadd.f32 %v903_v56, %v568_v10  ;;  %v936_v12 = vpop.f32.mrb[2].mxu1 }
 0x147   :  { %v937_v13 = vpop.f32.mrb[3].mxu1 }
 0x148   :  { %v938_v33 = vadd.f32 %v937_v13, %v936_v12 }
 0x14a   :  { %v708_v34 = vadd.f32 %v938_v33, %v638_v62 }
 0x162   :  { %v971_v0 = vpop.f32.mrb[4].mxu0 }
 0x163   :  { %v972_v14 = vpop.f32.mrb[5].mxu0 }
 0x164   :  { %v973_v15 = vadd.f32 %v972_v14, %v971_v0 }
 0x166   :  { %v778_v17 = vadd.f32 %v973_v15, %v708_v34 }
 0x168   :  { %781 = vst [vmem:[#allocation7] sm:$0x3] %v778_v17 }
 0x169   :  { %1196 = shalt.err (!%p1193_p6)
}
 0x16a   :  { %s1197_s17 = scalar_lea.hbm %s1454_s3, 32 }
 0x16b   :  { %p1198_p7 = scmp.ne.s32.totalorder %s1454_s3, %s1197_s17  ;;  %p1201_p8 = scmp.lt.u32.totalorder %s1197_s17, %s1454_s3 }
 0x16d   :  { %p1203_p9 = pnand %p1201_p8, %p1198_p7 }
 0x16f   :  { %1206 = shalt.err (!%p1203_p9)
}
 0x170   :  { %791 = dma.vmem_to_hbm [thread:$0]  %s789_s14, 32, %s1454_s3, [#allocation4]  }
 0x171   :  { %1211 = dma.done.wait [#allocation4], 32  }
 0x172   :  { %1212 = vsyncadd [#allocation4], 4294967264 }
 0x173   :  { %795 = vsyncpa [#allocation3], 1 }
 0x174   :  { %796 = vsyncpa [#allocation6], 1 }
 0x175   :  { %797 = vsyncpa [#allocation4], 1 }

</bundles_post_ra>
